<compile_context>
chip_gen: v7x
topology: tpu7x:2x2x1
jax: 0.10.0
libtpu: 0.0.40
codegen_flags: <defaults>
</compile_context>

<pallas_src>
import functools
import math

import jax
import jax.numpy as jnp
from jax.experimental import pallas as pl
from jax.experimental.pallas import tpu as pltpu

_EPS = 1e-9
_LANE = 128
# Budget for the double-buffered y + out blocks (real footprint, including the
# lane padding of the compact y block).  ~6 MiB output blocks for num_head=8.
_BIG_BLOCK_BUDGET_BYTES = 24 * 1024 * 1024
# Explicit scoped-VMEM limit: well above what we use, below v7x's 64 MiB
# physical VMEM (v5e/v6e have 128 MiB physical, so this is safe everywhere).
_VMEM_LIMIT_BYTES = 48 * 1024 * 1024


def _cdiv(a, b):
    return -(-a // b)


def _round_up(x, m):
    return _cdiv(x, m) * m


def _round_down(x, m):
    return (x // m) * m


def _expand_lanes_exact(y_f32, e_bf16):
    """Lane-expand y[r, g] -> z[r, l] = y[r, l // H] via a one-hot matmul.

    y is split into three bf16 pieces (8 + 8 + 8 mantissa bits = full f32
    mantissa), each multiplied by the exact 0.0/1.0 one-hot matrix with f32
    accumulation, so the reconstruction is bit-exact on every TPU generation
    regardless of f32-matmul precision settings.  The MXU is otherwise idle
    in this memory-bound kernel, so the expansion is effectively free.
    """
    y_hi = y_f32.astype(jnp.bfloat16)
    r1 = y_f32 - y_hi.astype(jnp.float32)
    y_lo = r1.astype(jnp.bfloat16)
    y_lo2 = (r1 - y_lo.astype(jnp.float32)).astype(jnp.bfloat16)

    def _dot(p):
        return jnp.dot(p, e_bf16, preferred_element_type=jnp.float32)

    return _dot(y_hi) + _dot(y_lo) + _dot(y_lo2)


def _make_adapt_heads_kernel(inverse):
    def kernel(y_ref, e_ref, w_ref, b_ref, o_ref):
        # y_ref: (rows_b, K) input dtype          e_ref: (K, W) bf16 one-hot
        # w_ref: (1, W) f32 = weight[l % H] + eps  b_ref: (1, W) f32 = bias[l % H]
        # o_ref: (rows_b, W) f32, lane-dense == the flat (N, H) row-major layout
        y = y_ref[...].astype(jnp.float32)        # in-kernel cast (no XLA pass)
        y_exp = _expand_lanes_exact(y, e_ref[...])
        w = w_ref[...]
        b = b_ref[...]
        if inverse:
            # Hoisted reciprocal: one (1, W) reciprocal per block instead of
            # rows_b*W divides (<= 1-2 ulp from torch's division).
            o_ref[...] = (y_exp - b) * pl.reciprocal(w, approx=False)
        else:
            o_ref[...] = y_exp * w + b

    return kernel


@functools.partial(jax.jit, static_argnames=("inverse",))
def adapt_heads(y, weight, bias, inverse=False):
    """Pallas implementation of ModelAdaptHeads.forward.

    Args:
      y:      any-shape float array; flattened like torch's y.view(-1, 1).
      weight: (1, num_head) float.
      bias:   (1, num_head) float.
      inverse: static bool selecting the inverse transform.

    Returns:
      (N, num_head) float32 array, N = y.size.
    """
    num_head = weight.shape[1]
    h = num_head
    # Output row width in lanes: multiple of 128 (lane-dense stores/DMAs) and
    # of num_head (each row covers whole [n, :] groups of the (N, H) layout).
    w_lanes = (h * _LANE) // math.gcd(h, _LANE)          # lcm(num_head, 128)
    k = w_lanes // h                                     # y elements per row

    y_flat = jnp.reshape(y, (-1,))
    n = y_flat.shape[0]                                  # static under jit
    rows_total = _cdiv(n, k)
    n_round = rows_total * k
    if n_round != n:
        # Only the ragged-N case pays a pad (and a prefix slice at the end).
        y_flat = jnp.pad(y_flat, (0, n_round - n))
    y2 = jnp.reshape(y_flat, (rows_total, k))

    # Tiny parameter rows + one-hot expansion matrix (O(W) work, hoisted here).
    w_row = (jnp.tile(jnp.reshape(weight, (h,)).astype(jnp.float32), k)
             + _EPS).reshape(1, w_lanes)
    b_row = jnp.tile(jnp.reshape(bias, (h,)).astype(jnp.float32),
                     k).reshape(1, w_lanes)
    col = jax.lax.broadcasted_iota(jnp.int32, (k, w_lanes), 1)
    row = jax.lax.broadcasted_iota(jnp.int32, (k, w_lanes), 0)
    e_mat = (col // h == row).astype(jnp.bfloat16)       # E[g, l] = (l//H == g)

    # ---- Tile selection with real (lane-padded) VMEM accounting ------------
    # The (rows_b, K) y block pads its minor dim up to 128 lanes in VMEM, so
    # for num_head=8 its footprint equals the output block's.
    k_pad = _round_up(k, _LANE)
    per_row_bytes = 4 * (w_lanes + k_pad)                # out + y, one buffer
    rows_cap = max(8, _round_down(
        _BIG_BLOCK_BUDGET_BYTES // (2 * per_row_bytes), 8))   # x2: double-buffer
    if rows_total <= rows_cap:
        # Single (possibly ragged) block; block == full dim is always legal.
        # Note: we deliberately do NOT force-split a single block (it only
        # helps v7x's 2 TCs and hurts v5e/v6e; single-block cases are
        # overhead-dominated anyway).
        rows_b = rows_total
    else:
        nsteps = _cdiv(rows_total, rows_cap)
        if nsteps % 2:
            nsteps += 1   # even grid -> balanced across v7x's two TensorCores
        rows_b = _round_up(_cdiv(rows_total, nsteps), 8)
    grid = (_cdiv(rows_total, rows_b),)

    out2 = pl.pallas_call(
        _make_adapt_heads_kernel(inverse),
        out_shape=jax.ShapeDtypeStruct((rows_total, w_lanes), jnp.float32),
        grid=grid,
        in_specs=[
            pl.BlockSpec((rows_b, k), lambda i: (i, 0)),       # y (compact)
            pl.BlockSpec((k, w_lanes), lambda i: (0, 0)),      # one-hot (resident)
            pl.BlockSpec((1, w_lanes), lambda i: (0, 0)),      # weight row
            pl.BlockSpec((1, w_lanes), lambda i: (0, 0)),      # bias row
        ],
        out_specs=pl.BlockSpec((rows_b, w_lanes), lambda i: (i, 0)),
        compiler_params=pltpu.CompilerParams(
            dimension_semantics=("parallel",),
            vmem_limit_bytes=_VMEM_LIMIT_BYTES),
    )(y2, e_mat, w_row, b_row)

    # Free reshape back to (N, num_head); prefix slice only in the ragged case.
    out_flat = jnp.reshape(out2, (-1,))
    if n_round != n:
        out_flat = out_flat[: n * h]
    return jnp.reshape(out_flat, (n, h))


def init_adapt_heads_params(key, num_head):
    """Deterministic parameter init matching the torch module's __init__."""
    weight = jax.random.uniform(
        key, (1, num_head), minval=0.75, maxval=1.25, dtype=jnp.float32)
    bias = jnp.ones((1, num_head), dtype=jnp.float32) / 8.0
    return weight, bias


def _reference_fwd(y, weight, bias):
    y_col = jnp.reshape(y, (-1, 1)).astype(jnp.float32)
    return (weight + _EPS) * y_col + bias


def _reference_inv(y, weight, bias):
    y_col = jnp.reshape(y, (-1, 1)).astype(jnp.float32)
    return (y_col - bias) / (weight + _EPS)


if __name__ == "__main__":
    key = jax.random.PRNGKey(0)
    k_param, k_y, k_y2, k_y3 = jax.random.split(key, 4)

    num_head = 8
    weight, bias = init_adapt_heads_params(k_param, num_head)

    # Small demo input: (2, 8) batch of scalars -> N = 16 rows (single block,
    # zero-copy wrapper path since 16 % 16 == 0).
    y = jax.random.normal(k_y, (2, 8), dtype=jnp.float32)
    out_fwd = adapt_heads(y, weight, bias, inverse=False)
    out_inv = adapt_heads(out_fwd[:, 0], weight, bias, inverse=True)
    jax.block_until_ready(out_fwd)
    jax.block_until_ready(out_inv)

    assert out_fwd.shape == (y.size, num_head)
    assert jnp.allclose(out_fwd, _reference_fwd(y, weight, bias),
                        atol=1e-6, rtol=1e-6)
    assert jnp.allclose(out_inv, _reference_inv(out_fwd[:, 0], weight, bias),
                        atol=1e-6, rtol=1e-6)

    # Ragged N (not a multiple of 16): exercises the pad + prefix-slice path.
    y_rag = jax.random.normal(k_y2, (3000,), dtype=jnp.float32)
    out_rag = adapt_heads(y_rag, weight, bias, inverse=False)
    out_rag_inv = adapt_heads(y_rag, weight, bias, inverse=True)
    jax.block_until_ready(out_rag)
    jax.block_until_ready(out_rag_inv)
    assert out_rag.shape == (3000, num_head)
    assert jnp.allclose(out_rag, _reference_fwd(y_rag, weight, bias),
                        atol=1e-6, rtol=1e-6)
    assert jnp.allclose(out_rag_inv, _reference_inv(y_rag, weight, bias),
                        atol=1e-6, rtol=1e-6)

    # Larger N (multiple of 16): zero-copy wrapper path with a multi-step,
    # even grid and a ragged (masked) boundary block.
    y_big = jax.random.normal(k_y3, (300_000,), dtype=jnp.float32)
    out_big = adapt_heads(y_big, weight, bias, inverse=False)
    jax.block_until_ready(out_big)
    assert out_big.shape == (300_000, num_head)
    assert jnp.allclose(out_big, _reference_fwd(y_big, weight, bias),
                        atol=1e-6, rtol=1e-6)

    print("KERNEL_OK")
</pallas_src>

<mosaic_0001>
module attributes {stable_mosaic.version = 11 : i64} {
  func.func @kernel(%arg0: i32, %arg1: memref<1x16xf32, #tpu.memory_space<vmem>>, %arg2: memref<16x128xbf16, #tpu.memory_space<vmem>>, %arg3: memref<1x128xf32, #tpu.memory_space<vmem>>, %arg4: memref<1x128xf32, #tpu.memory_space<vmem>>, %arg5: memref<1x128xf32, #tpu.memory_space<vmem>>) attributes {dimension_semantics = [#tpu.dimension_semantics<parallel>], iteration_bounds = array<i64: 1>, scalar_prefetch = 0 : i64, scratch_operands = 0 : i64, tpu.core_type = #tpu.core_type<tc>, window_params = [{transform_indices = @transform_0, window_bounds = array<i64: 1, 16>}, {pipeline_mode = #tpu.pipeline_mode<synchronous>, transform_indices = @transform_1, window_bounds = array<i64: 16, 128>}, {pipeline_mode = #tpu.pipeline_mode<synchronous>, transform_indices = @transform_2, window_bounds = array<i64: 1, 128>}, {pipeline_mode = #tpu.pipeline_mode<synchronous>, transform_indices = @transform_3, window_bounds = array<i64: 1, 128>}, {transform_indices = @transform_4, window_bounds = array<i64: 1, 128>}]} {
    %c0 = arith.constant 0 : index
    %c0_0 = arith.constant 0 : index
    %0 = vector.load %arg1[%c0, %c0_0] : memref<1x16xf32, #tpu.memory_space<vmem>>, vector<1x16xf32>
    %c0_1 = arith.constant 0 : index
    %c0_2 = arith.constant 0 : index
    %1 = vector.load %arg2[%c0_1, %c0_2] : memref<16x128xbf16, #tpu.memory_space<vmem>>, vector<16x128xbf16>
    %2 = arith.truncf %0 : vector<1x16xf32> to vector<1x16xbf16>
    %3 = arith.extf %2 : vector<1x16xbf16> to vector<1x16xf32>
    %4 = arith.subf %0, %3 : vector<1x16xf32>
    %5 = arith.truncf %4 : vector<1x16xf32> to vector<1x16xbf16>
    %6 = arith.extf %5 : vector<1x16xbf16> to vector<1x16xf32>
    %7 = arith.subf %4, %6 : vector<1x16xf32>
    %8 = arith.truncf %7 : vector<1x16xf32> to vector<1x16xbf16>
    %cst = arith.constant dense<0.000000e+00> : vector<1x128xf32>
    %9 = tpu.matmul %2, %1, %cst {dimension_numbers = #tpu.dot_dimension_numbers<[1], [0], [0], [1], [0, 0, 1, 1], [], []>} : vector<1x16xbf16>, vector<16x128xbf16>, vector<1x128xf32> -> vector<1x128xf32>
    %cst_3 = arith.constant dense<0.000000e+00> : vector<1x128xf32>
    %10 = tpu.matmul %5, %1, %cst_3 {dimension_numbers = #tpu.dot_dimension_numbers<[1], [0], [0], [1], [0, 0, 1, 1], [], []>} : vector<1x16xbf16>, vector<16x128xbf16>, vector<1x128xf32> -> vector<1x128xf32>
    %11 = arith.addf %9, %10 : vector<1x128xf32>
    %cst_4 = arith.constant dense<0.000000e+00> : vector<1x128xf32>
    %12 = tpu.matmul %8, %1, %cst_4 {dimension_numbers = #tpu.dot_dimension_numbers<[1], [0], [0], [1], [0, 0, 1, 1], [], []>} : vector<1x16xbf16>, vector<16x128xbf16>, vector<1x128xf32> -> vector<1x128xf32>
    %13 = arith.addf %11, %12 : vector<1x128xf32>
    %c0_5 = arith.constant 0 : index
    %c0_6 = arith.constant 0 : index
    %14 = vector.load %arg3[%c0_5, %c0_6] : memref<1x128xf32, #tpu.memory_space<vmem>>, vector<1x128xf32>
    %c0_7 = arith.constant 0 : index
    %c0_8 = arith.constant 0 : index
    %15 = vector.load %arg4[%c0_7, %c0_8] : memref<1x128xf32, #tpu.memory_space<vmem>>, vector<1x128xf32>
    %16 = arith.mulf %13, %14 : vector<1x128xf32>
    %17 = arith.addf %16, %15 : vector<1x128xf32>
    %c0_9 = arith.constant 0 : index
    %c0_10 = arith.constant 0 : index
    %18 = vector.load %arg5[%c0_9, %c0_10] : memref<1x128xf32, #tpu.memory_space<vmem>>, vector<1x128xf32>
    tpu.vector_store %arg5[%c0_9, %c0_10], %17 {strides = array<i32>} : memref<1x128xf32, #tpu.memory_space<vmem>>, vector<1x128xf32>,
    return
  }
  func.func @transform_0(%arg0: i32) -> (i32, i32) {
    %c0_i32 = arith.constant 0 : i32
    %c0_i32_0 = arith.constant 0 : i32
    return %arg0, %c0_i32 : i32, i32
  }
  func.func @transform_1(%arg0: i32) -> (i32, i32) {
    %c0_i32 = arith.constant 0 : i32
    %c0_i32_0 = arith.constant 0 : i32
    %c0_i32_1 = arith.constant 0 : i32
    return %c0_i32, %c0_i32_0 : i32, i32
  }
  func.func @transform_2(%arg0: i32) -> (i32, i32) {
    %c0_i32 = arith.constant 0 : i32
    %c0_i32_0 = arith.constant 0 : i32
    %c0_i32_1 = arith.constant 0 : i32
    return %c0_i32, %c0_i32_0 : i32, i32
  }
  func.func @transform_3(%arg0: i32) -> (i32, i32) {
    %c0_i32 = arith.constant 0 : i32
    %c0_i32_0 = arith.constant 0 : i32
    %c0_i32_1 = arith.constant 0 : i32
    return %c0_i32, %c0_i32_0 : i32, i32
  }
  func.func @transform_4(%arg0: i32) -> (i32, i32) {
    %c0_i32 = arith.constant 0 : i32
    %c0_i32_0 = arith.constant 0 : i32
    return %arg0, %c0_i32 : i32, i32
  }
}

</mosaic_0001>

<bundles_post_ra>
// kernel: adapt_heads.1
= control target key start
LH: loop header
LB: loop body
LE: loop exit
PB: predicated region body
PF: predicated region fallthrough
CT: control target
= control target key end

     0   :  { %v210_v0 = vmov 0.0   ;;  %vm211_vm0 = vmmov 0   ;;  %vm34_vm1 = vcmask 130048   ;;  %s252_s1 = inlined_call_operand.vmem [shape: bf16[16,128], index: 1, kind: input, shape index: {}]   ;;  %s253_s0 = inlined_call_operand.vmem [shape: f32[1,16], index: 0, kind: input, shape index: {}]   ;;  %s254_s2 = inlined_call_operand.vmem [shape: f32[1,128], index: 2, kind: input, shape index: {}]   ;;  %s255_s3 = inlined_call_operand.vmem [shape: f32[1,128], index: 3, kind: input, shape index: {}]   ;;  %s256_s4 = inlined_call_operand.vmem [shape: f32[1,128], index: 4, kind: output, shape index: {}]  }
   0x1   :  { %190 = vmatprep.subr.bf16.mxu0 %v210_v0  ;;  %v209_v1 = vld [vmem:[%s252_s1] sm:$0xff]   ;;  %192 = vmatprep.mubr.msk.bf16.mxu0 %vm211_vm0, %v210_v0 }
   0x2   :  { %v18_v2 = vld [vmem:[%s253_s0] sm:$0x1]  ;;  %184 = vmatprep.subr.bf16.mxu1 %v210_v0  ;;  %186 = vmatprep.mubr.msk.bf16.mxu1 %vm211_vm0, %v210_v0 }
   0x3   :  { %191 = vmatpush3.bf16.msra.mxu0 %v209_v1  ;;  %v21_v3 = vpack.c.bf16 %v18_v2, %v18_v2  ;;  %185 = vmatpush3.bf16.msra.mxu1 %v209_v1  ;;  %v165_v15 = vld [vmem:[%s254_s2] sm:$0x1] }
   0x4   :  { %196 = vmatprep.subr.bf16.mxu0 %v210_v0  ;;  %v166_v18 = vld [vmem:[%s255_s3] sm:$0x1] }
   0x5   :  { %v22_v4 = vunpack.c.l.bf16 %v21_v3 }
   0x6   :  { %193 = vmatmul.mubr.msk.bf16.vlgmr.msra.gmra.mrb[0].mxu0 %vm34_vm1, %v21_v3 }
   0x7   :  { %197 = vmatpush3.bf16.msra.mxu0 %v209_v1  ;;  %v23_v5 = vsub.f32 %v18_v2, %v22_v4  ;;  %198 = vmatprep.mubr.msk.bf16.mxu0 %vm211_vm0, %v210_v0 }
   0x9   :  { %v24_v6 = vpack.c.bf16 %v23_v5, %v23_v5 }
   0xb   :  { %v25_v7 = vunpack.c.l.bf16 %v24_v6  ;;  %187 = vmatmul.mubr.msk.bf16.vlgmr.msra.gmra.mrb[0].mxu1 %vm34_vm1, %v24_v6 }
   0xd   :  { %v26_v8 = vsub.f32 %v23_v5, %v25_v7 }
   0xf   :  { %v27_v9 = vpack.c.bf16 %v26_v8, %v26_v8 }
  0x12   :  { %199 = vmatmul.mubr.msk.bf16.vlgmr.msra.gmra.mrb[0].mxu0 %vm34_vm1, %v27_v9 }
  0xde   :  { %v72_v10 = vpop.f32.mrb[0].mxu1 }
  0xdf   :  { %v188_v11 = vpop.f32.mrb[1].mxu1 }
  0xe0   :  { %v75_v12 = vpop.f32.mrb[2].mxu1 }
  0xe1   :  { %v189_v13 = vpop.f32.mrb[3].mxu1 }
  0xe5   :  { %v158_v14 = vpop.f32.mrb[0].mxu0 }
  0xe6   :  { %v202_v16 = vadd.f32 %v158_v14, %v72_v10  ;;  %v200_v17 = vpop.f32.mrb[1].mxu0 }
  0xe7   :  { %v161_v19 = vpop.f32.mrb[2].mxu0 }
  0xe8   :  { %v167_v20 = vmul.f32 %v202_v16, %v165_v15  ;;  %v201_v21 = vpop.f32.mrb[3].mxu0 }
  0xea   :  { %v168_v22 = vadd.f32 %v167_v20, %v166_v18 }
  0xec   :  { %169 = vst [vmem:[%s256_s4] sm:$0x1] %v168_v22 }

</bundles_post_ra>
